<compile_context>
chip_gen: v7x
topology: tpu7x:2x2x1
jax: 0.10.0
libtpu: 0.0.40
codegen_flags: <defaults>
</compile_context>

<pallas_src>
import functools

import jax
import jax.numpy as jnp
from jax.experimental import pallas as pl
from jax.experimental.pallas import tpu as pltpu

_EPS = 1e-8  # torch cosine_similarity default eps


# ----------------------------------------------------------------------------
# Kernels
# ----------------------------------------------------------------------------
def _criterion_kernel_whole_d(x1_ref, x2_ref, out_ref):
    """D kept whole per block: [TB, D] tiles -> [TB, 1] per-row (1 - sim)."""
    x1 = x1_ref[...].astype(jnp.float32)
    x2 = x2_ref[...].astype(jnp.float32)

    dot = jnp.sum(x1 * x2, axis=1, keepdims=True)   # [TB, 1]
    s1 = jnp.sum(x1 * x1, axis=1, keepdims=True)    # ||x1||^2
    s2 = jnp.sum(x2 * x2, axis=1, keepdims=True)    # ||x2||^2

    # torch/ATen: sims = dot * rsqrt(clamp_min(||x1||^2 * ||x2||^2, eps^2))
    eps_sq = jnp.float32(_EPS * _EPS)
    denom_sq = jnp.maximum(s1 * s2, eps_sq)
    out_ref[...] = 1.0 - dot * jax.lax.rsqrt(denom_sq)


def _criterion_kernel_tiled_d(x1_ref, x2_ref, out_ref,
                              dot_acc, s1_acc, s2_acc,
                              *, td, d_total, mask_d):
    """Large-D path: grid=(B tiles, D tiles); accumulate partial reductions."""
    k = pl.program_id(1)

    @pl.when(k == 0)
    def _():
        dot_acc[...] = jnp.zeros_like(dot_acc)
        s1_acc[...] = jnp.zeros_like(s1_acc)
        s2_acc[...] = jnp.zeros_like(s2_acc)

    x1 = x1_ref[...].astype(jnp.float32)
    x2 = x2_ref[...].astype(jnp.float32)

    if mask_d:  # static branch: ragged last D block -> zero padded columns
        col = jax.lax.broadcasted_iota(jnp.int32, x1.shape, 1) + k * td
        valid = col < d_total
        x1 = jnp.where(valid, x1, 0.0)
        x2 = jnp.where(valid, x2, 0.0)

    dot_acc[...] += jnp.sum(x1 * x2, axis=1, keepdims=True)
    s1_acc[...] += jnp.sum(x1 * x1, axis=1, keepdims=True)
    s2_acc[...] += jnp.sum(x2 * x2, axis=1, keepdims=True)

    @pl.when(k == pl.num_programs(1) - 1)
    def _():
        eps_sq = jnp.float32(_EPS * _EPS)
        denom_sq = jnp.maximum(s1_acc[...] * s2_acc[...], eps_sq)
        out_ref[...] = 1.0 - dot_acc[...] * jax.lax.rsqrt(denom_sq)


# ----------------------------------------------------------------------------
# Tile sizing
# ----------------------------------------------------------------------------
def _vmem_capacity_bytes() -> int:
    try:
        return int(pltpu.get_tpu_info().vmem_capacity_bytes)
    except Exception:
        return 64 * 1024 * 1024  # conservative (v7x-sized) fallback


def _pick_tiles(batch: int, dim: int, itemsize: int, align: int,
                max_block_bytes=None):
    """Choose (tb, td, vmem_limit_bytes) purely from a byte budget."""
    phys = _vmem_capacity_bytes()
    # 2 inputs x 2 pipeline buffers must fit comfortably under the scoped
    # VMEM limit; keep ~35% headroom vs. physical VMEM on every generation.
    pipeline_budget = min(int(phys * 0.65), 96 << 20)
    if max_block_bytes is None:
        block_budget = min(8 << 20, pipeline_budget // 4)  # per input block
    else:
        block_budget = int(max_block_bytes)  # test/override knob

    b_pad = -(-batch // align) * align
    row_bytes = dim * itemsize
    tb_rows = (block_budget // max(1, row_bytes)) // align * align

    if tb_rows >= align:
        # Common path: D kept whole, as many rows as the budget allows.
        tb = min(tb_rows, b_pad)
        td = dim
    else:
        # Very large D: minimal row tile, tile the feature axis instead.
        tb = min(align, b_pad)
        td_cols = (block_budget // max(1, tb * itemsize)) // 128 * 128
        td = int(min(dim, max(128, td_cols)))

    return tb, td, pipeline_budget


# ----------------------------------------------------------------------------
# Wrapper
# ----------------------------------------------------------------------------
@functools.partial(jax.jit, static_argnames=("max_block_bytes",))
def criterion(x1: jax.Array, x2: jax.Array, *, max_block_bytes=None) -> jax.Array:
    """Pallas equivalent of Criterion.forward(x1, x2). Returns scalar f32."""
    assert x1.shape == x2.shape and x1.ndim == 2
    B, D = x1.shape
    it1 = jnp.dtype(x1.dtype).itemsize
    it2 = jnp.dtype(x2.dtype).itemsize
    itemsize = max(it1, it2)                  # conservative for byte sizing
    align = 16 if min(it1, it2) < 4 else 8    # bf16 packs 16 rows per vreg

    tb, td, vmem_limit = _pick_tiles(B, D, itemsize, align, max_block_bytes)
    grid_b = pl.cdiv(B, tb)

    cost = pl.CostEstimate(
        flops=6 * B * D,
        transcendentals=B,
        bytes_accessed=2 * B * D * itemsize + 4 * B,
    )

    if td == D:
        per_row = pl.pallas_call(
            _criterion_kernel_whole_d,
            out_shape=jax.ShapeDtypeStruct((B, 1), jnp.float32),
            grid=(grid_b,),
            in_specs=[
                pl.BlockSpec((tb, D), lambda i: (i, 0)),
                pl.BlockSpec((tb, D), lambda i: (i, 0)),
            ],
            out_specs=pl.BlockSpec((tb, 1), lambda i: (i, 0)),
            compiler_params=pltpu.CompilerParams(
                dimension_semantics=("parallel",),
                vmem_limit_bytes=vmem_limit,
            ),
            cost_estimate=cost,
        )(x1, x2)
    else:
        grid_d = pl.cdiv(D, td)
        kernel = functools.partial(
            _criterion_kernel_tiled_d, td=td, d_total=D, mask_d=(D % td != 0))
        per_row = pl.pallas_call(
            kernel,
            out_shape=jax.ShapeDtypeStruct((B, 1), jnp.float32),
            grid=(grid_b, grid_d),
            in_specs=[
                pl.BlockSpec((tb, td), lambda i, k: (i, k)),
                pl.BlockSpec((tb, td), lambda i, k: (i, k)),
            ],
            out_specs=pl.BlockSpec((tb, 1), lambda i, k: (i, 0)),
            scratch_shapes=[
                pltpu.VMEM((tb, 1), jnp.float32),
                pltpu.VMEM((tb, 1), jnp.float32),
                pltpu.VMEM((tb, 1), jnp.float32),
            ],
            compiler_params=pltpu.CompilerParams(
                dimension_semantics=("parallel", "arbitrary"),
                vmem_limit_bytes=vmem_limit,
            ),
            cost_estimate=cost,
        )(x1, x2)

    # Tiny exact final reduction over the true batch size in the wrapper.
    return jnp.sum(per_row) / jnp.float32(B)


def _criterion_ref(x1, x2):
    """Pure-JAX reference (ATen cosine_similarity eps-on-product semantics)."""
    x1 = x1.astype(jnp.float32)
    x2 = x2.astype(jnp.float32)
    dot = jnp.sum(x1 * x2, axis=1)
    nsq = jnp.sum(x1 * x1, axis=1) * jnp.sum(x2 * x2, axis=1)
    sims = dot / jnp.sqrt(jnp.maximum(nsq, _EPS * _EPS))
    return jnp.mean(1.0 - sims)


if __name__ == "__main__":
    key = jax.random.PRNGKey(0)
    k1, k2, k3, k4, k5, k6, k7, k8 = jax.random.split(key, 8)

    # Case 1: small aligned batch (e.g. ResNet feature vectors).
    x1 = jax.random.normal(k1, (8, 128), dtype=jnp.float32)
    x2 = jax.random.normal(k2, (8, 128), dtype=jnp.float32)
    loss = jax.block_until_ready(criterion(x1, x2))
    ref = _criterion_ref(x1, x2)
    assert jnp.allclose(loss, ref, atol=1e-5, rtol=1e-5), (loss, ref)

    # Case 2: ragged batch (not a multiple of the tile) -> masked write-back.
    y1 = jax.random.normal(k3, (20, 128), dtype=jnp.float32)
    y2 = jax.random.normal(k4, (20, 128), dtype=jnp.float32)
    loss2 = jax.block_until_ready(criterion(y1, y2))
    ref2 = _criterion_ref(y1, y2)
    assert jnp.allclose(loss2, ref2, atol=1e-5, rtol=1e-5), (loss2, ref2)

    # Case 3: force the large-D (D-tiled + scratch accumulators + ragged-D
    # column masking) path with a tiny block-byte override.
    z1 = jax.random.normal(k5, (12, 384), dtype=jnp.float32)
    z2 = jax.random.normal(k6, (12, 384), dtype=jnp.float32)
    loss3 = jax.block_until_ready(criterion(z1, z2, max_block_bytes=8192))
    ref3 = _criterion_ref(z1, z2)
    assert jnp.allclose(loss3, ref3, atol=1e-5, rtol=1e-5), (loss3, ref3)

    # Case 4: bf16 inputs (16-row sublane alignment path).
    w1 = jax.random.normal(k7, (20, 128), dtype=jnp.bfloat16)
    w2 = jax.random.normal(k8, (20, 128), dtype=jnp.bfloat16)
    loss4 = jax.block_until_ready(criterion(w1, w2))
    ref4 = _criterion_ref(w1, w2)
    assert jnp.allclose(loss4, ref4, atol=1e-4, rtol=1e-4), (loss4, ref4)

    print("KERNEL_OK")
</pallas_src>

<mosaic_0001>
module attributes {stable_mosaic.version = 11 : i64} {
  func.func @_criterion_kernel_whole_d(%arg0: i32, %arg1: memref<8x128xf32, #tpu.memory_space<vmem>>, %arg2: memref<8x128xf32, #tpu.memory_space<vmem>>, %arg3: memref<8x1xf32, #tpu.memory_space<vmem>>) attributes {dimension_semantics = [#tpu.dimension_semantics<parallel>], iteration_bounds = array<i64: 1>, scalar_prefetch = 0 : i64, scratch_operands = 0 : i64, tpu.core_type = #tpu.core_type<tc>, window_params = [{transform_indices = @transform_0, window_bounds = array<i64: 8, 128>}, {transform_indices = @transform_1, window_bounds = array<i64: 8, 128>}, {transform_indices = @transform_2, window_bounds = array<i64: 8, 1>}]} {
    %c0 = arith.constant 0 : index
    %c0_0 = arith.constant 0 : index
    %0 = vector.load %arg1[%c0, %c0_0] : memref<8x128xf32, #tpu.memory_space<vmem>>, vector<8x128xf32>
    %c0_1 = arith.constant 0 : index
    %c0_2 = arith.constant 0 : index
    %1 = vector.load %arg2[%c0_1, %c0_2] : memref<8x128xf32, #tpu.memory_space<vmem>>, vector<8x128xf32>
    %2 = arith.mulf %0, %1 : vector<8x128xf32>
    %cst = arith.constant dense<0.000000e+00> : vector<8xf32>
    %3 = vector.multi_reduction <add>, %2, %cst [1] : vector<8x128xf32> to vector<8xf32>
    %4 = vector.shape_cast %3 : vector<8xf32> to vector<8x1xf32>
    %5 = arith.mulf %0, %0 : vector<8x128xf32>
    %cst_3 = arith.constant dense<0.000000e+00> : vector<8xf32>
    %6 = vector.multi_reduction <add>, %5, %cst_3 [1] : vector<8x128xf32> to vector<8xf32>
    %7 = vector.shape_cast %6 : vector<8xf32> to vector<8x1xf32>
    %8 = arith.mulf %1, %1 : vector<8x128xf32>
    %cst_4 = arith.constant dense<0.000000e+00> : vector<8xf32>
    %9 = vector.multi_reduction <add>, %8, %cst_4 [1] : vector<8x128xf32> to vector<8xf32>
    %10 = vector.shape_cast %9 : vector<8xf32> to vector<8x1xf32>
    %11 = arith.mulf %7, %10 : vector<8x1xf32>
    %cst_5 = arith.constant 1.000000e-16 : f32
    %12 = vector.broadcast %cst_5 : f32 to vector<8x1xf32>
    %13 = arith.maximumf %11, %12 : vector<8x1xf32>
    %14 = math.rsqrt %13 : vector<8x1xf32>
    %15 = arith.mulf %4, %14 : vector<8x1xf32>
    %cst_6 = arith.constant 1.000000e+00 : f32
    %16 = vector.broadcast %cst_6 : f32 to vector<8x1xf32>
    %17 = arith.subf %16, %15 : vector<8x1xf32>
    %c0_7 = arith.constant 0 : index
    %c0_8 = arith.constant 0 : index
    %18 = vector.load %arg3[%c0_7, %c0_8] : memref<8x1xf32, #tpu.memory_space<vmem>>, vector<8x1xf32>
    tpu.vector_store %arg3[%c0_7, %c0_8], %17 {strides = array<i32>} : memref<8x1xf32, #tpu.memory_space<vmem>>, vector<8x1xf32>,
    return
  }
  func.func @transform_0(%arg0: i32) -> (i32, i32) {
    %c0_i32 = arith.constant 0 : i32
    %c0_i32_0 = arith.constant 0 : i32
    return %arg0, %c0_i32 : i32, i32
  }
  func.func @transform_1(%arg0: i32) -> (i32, i32) {
    %c0_i32 = arith.constant 0 : i32
    %c0_i32_0 = arith.constant 0 : i32
    return %arg0, %c0_i32 : i32, i32
  }
  func.func @transform_2(%arg0: i32) -> (i32, i32) {
    %c0_i32 = arith.constant 0 : i32
    %c0_i32_0 = arith.constant 0 : i32
    return %arg0, %c0_i32 : i32, i32
  }
}

</mosaic_0001>

<bundles_post_ra>
// kernel: criterion.1
= control target key start
LH: loop header
LB: loop body
LE: loop exit
PB: predicated region body
PF: predicated region fallthrough
CT: control target
= control target key end

     0   :  { %7 = vsyncpa [#allocation3], 0  ;;  %s155_s0 = inlined_call_operand.hbm [shape: f32[8,128], index: 0, kind: input, shape index: {}]   ;;  %s156_s1 = inlined_call_operand.hbm [shape: f32[8,128], index: 1, kind: input, shape index: {}]   ;;  %s157_s2 = inlined_call_operand.vmem [shape: f32[8,1], index: 2, kind: output, shape index: {}]  }
   0x1   :  { %8 = vsyncpa [#allocation5], 0  ;;  %s111_s9 = smov [#allocation2]   ;;  %s112_s11 = smov [#allocation4]  }
   0x2   :  { %s15_s10 = sshll.u32 %s111_s9, 4  ;;  %s25_s12 = sshll.u32 %s112_s11, 4  ;;  %s16_s10 = int_to_ptr.vmem [resolvable:$true] %s15_s10  ;;  %s26_s12 = int_to_ptr.vmem [resolvable:$true] %s25_s12 }
   0x3   :  { %s63_s15 = scalar_lea.hbm %s155_s0, 128 }
   0x4   :  { %p64_p0 = scmp.ne.s32.totalorder %s155_s0, %s63_s15  ;;  %p67_p1 = scmp.lt.u32.totalorder %s63_s15, %s155_s0 }
   0x6   :  { %p69_p2 = pnand %p67_p1, %p64_p0 }
   0x8   :  { %72 = shalt.err (!%p69_p2)
}
   0x9   :  { %s73_s20 = scalar_lea.vmem %s16_s10, 128  ;;  %p78_p4 = scmp.lt.s32.totalorder %s16_s10, %s16_s10 }
   0xa   :  { %p74_p3 = scmp.ne.s32.totalorder %s16_s10, %s73_s20  ;;  %p79_p5 = scmp.lt.s32.totalorder %s73_s20, %s73_s20 }
   0xc   :  { %p80_p6 = por %p79_p5, %p78_p4 }
   0xe   :  { %p81_p7 = pnand %p80_p6, %p74_p3 }
  0x10   :  { %84 = shalt.err (!%p81_p7)
}
  0x11   :  { %18 = dma.hbm_to_vmem [thread:$0]  %s155_s0, 128, %s16_s10, [#allocation3]  }
  0x12   :  { %s85_s25 = scalar_lea.hbm %s156_s1, 128 }
  0x13   :  { %p86_p8 = scmp.ne.s32.totalorder %s156_s1, %s85_s25  ;;  %p89_p9 = scmp.lt.u32.totalorder %s85_s25, %s156_s1 }
  0x15   :  { %p91_p10 = pnand %p89_p9, %p86_p8 }
  0x17   :  { %94 = shalt.err (!%p91_p10)
}
  0x18   :  { %s95_s30 = scalar_lea.vmem %s26_s12, 128  ;;  %p100_p12 = scmp.lt.s32.totalorder %s26_s12, %s26_s12 }
  0x19   :  { %p96_p11 = scmp.ne.s32.totalorder %s26_s12, %s95_s30  ;;  %p101_p13 = scmp.lt.s32.totalorder %s95_s30, %s95_s30 }
  0x1b   :  { %p102_p0 = por %p101_p13, %p100_p12 }
  0x1d   :  { %p103_p1 = pnand %p102_p0, %p96_p11 }
  0x1f   :  { %106 = shalt.err (!%p103_p1)
}
  0x20   :  { %28 = dma.hbm_to_vmem [thread:$0]  %s156_s1, 128, %s26_s12, [#allocation5]  }
  0x21   :  { %107 = dma.done.wait [#allocation3], 128  }
  0x22   :  { %108 = vsyncadd [#allocation3], 4294967168 }
  0x23   :  { %109 = dma.done.wait [#allocation5], 128  }
  0x24   :  { %110 = vsyncadd [#allocation5], 4294967168  ;;  %v35_v0 = vld [vmem:[#allocation2] sm:$0xff]  ;;  %v36_v1 = vld [vmem:[#allocation4] sm:$0xff]  ;;  %vm51_vm0 = vcmask 7168  }
  0x25   :  { %v40_v2 = vmul.f32 %v35_v0, %v35_v0  ;;  %v37_v3 = vmul.f32 %v36_v1, %v35_v0  ;;  %v43_v4 = vmul.f32 %v36_v1, %v36_v1 }
  0x27   :  { %41 = vadd.xlane.f32.xlu0 %v40_v2  ;;  %38 = vadd.xlane.f32.xlu1 %v37_v3 }
  0x2b   :  { %44 = vadd.xlane.f32.xlu0 %v43_v4 }
  0xb4   :  { %v42_v5 = vpop.xlane.xlu0 %41  ;;  %v39_v9 = vpop.xlane.xlu1 %38 }
  0xb8   :  { %v45_v6 = vpop.xlane.xlu0 %44 }
  0xb9   :  { %v46_v7 = vmul.f32 %v45_v6, %v42_v5 }
  0xbb   :  { %v47_v8 = vmax.f32 %v46_v7, 1e-16 }
  0xbd   :  { %61 = vrsqrt.f32 %v47_v8 }
  0xc7   :  { %v62_v10 = vpop.eup %61 }
  0xc8   :  { %v49_v11 = vmul.f32 %v62_v10, %v39_v9 }
  0xca   :  { %v50_v12 = vsub.f32 1.0, %v49_v11 }
  0xcc   :  { %52 = vst.msk [vmem:[%s157_s2] sm:$0xff] %vm51_vm0, %v50_v12 }
  0xcd   :  { %57 = vsyncpa [#allocation3], 1 }
  0xce   :  { %58 = vsyncpa [#allocation5], 1 }

</bundles_post_ra>
